<compile_context>
chip_gen: v7x
topology: tpu7x:2x2x1
jax: 0.10.0
libtpu: 0.0.40
codegen_flags: <defaults>
</compile_context>

<pallas_src>
import functools

import jax
import jax.numpy as jnp
from jax.experimental import pallas as pl
from jax.experimental.pallas import tpu as pltpu


def _round_up(x, m):
    return ((x + m - 1) // m) * m


def _cdiv(a, b):
    return (a + b - 1) // b


def actor_mlp_kernel(x_ref, w1_ref, b1_ref, w2_ref, b2_ref, w3_ref, b3_ref,
                     out_ref, *, compute_dtype):
    # Fused 3-layer MLP on one batch tile: matmuls on the MXU, tanh on the EUP.
    # `compute_dtype` = bf16 casts the MXU operands (f32 accumulation kept via
    # preferred_element_type); with f32 the casts are no-ops.
    x = x_ref[...].astype(compute_dtype)
    h1 = jnp.tanh(
        jnp.dot(x, w1_ref[...].astype(compute_dtype),
                preferred_element_type=jnp.float32) + b1_ref[...]
    )
    h2 = jnp.tanh(
        jnp.dot(h1.astype(compute_dtype), w2_ref[...].astype(compute_dtype),
                preferred_element_type=jnp.float32) + b2_ref[...]
    )
    means = jnp.dot(h2.astype(compute_dtype), w3_ref[...].astype(compute_dtype),
                    preferred_element_type=jnp.float32) + b3_ref[...]
    out_ref[...] = means.astype(out_ref.dtype)


@functools.partial(jax.jit, static_argnames=("batch_tile", "use_bf16"))
def actor_forward(x, params, batch_tile=2048, use_bf16=False):
    """Returns (means [B, n_actions], stds [n_actions]) — the Normal's parameters."""
    B, S = x.shape
    H = params["w1"].shape[1]
    A = params["w3"].shape[1]

    # Output features: pad only up to a multiple of 8 (not 128). The output block's
    # last dim equals the full array's last dim, so the BlockSpec is legal; the small
    # masked store is ~TB/8 instructions and hides under the MXU, while HBM writeback
    # stays within 2x of useful bytes (vs 32x with 128-wide padding).
    A_pad = _round_up(A, 8)
    if A_pad != A:
        w3 = jnp.pad(params["w3"], ((0, 0), (0, A_pad - A)))
        b3 = jnp.pad(params["b3"], ((0, 0), (0, A_pad - A)))
    else:
        w3, b3 = params["w3"], params["b3"]

    # Batch tiling:
    #   * big tiles (default 2048) to amortize ~0.35 us/step grid overhead,
    #   * ceil-split the batch over the tile count so padding wastes < 8 rows/tile,
    #   * >= 2 grid steps when B is large enough so dimension_semantics=("parallel",)
    #     actually uses both TensorCores on v7x.
    B8 = _round_up(B, 8)
    TB_cap = max(8, min(_round_up(batch_tile, 8), B8))
    num_tiles = _cdiv(B8, TB_cap)
    if B8 >= 16:
        num_tiles = max(num_tiles, 2)
    TB = _round_up(_cdiv(B, num_tiles), 8)
    B_pad = TB * num_tiles

    # Note: for non-tile-aligned B this jnp.pad / final slice are extra (tiny) XLA
    # copies; wasted rows are < 8 per tile after the ceil-split above.
    x_pad = jnp.pad(x, ((0, B_pad - B), (0, 0))) if B_pad != B else x

    compute_dtype = jnp.bfloat16 if use_bf16 else jnp.float32
    kernel = functools.partial(actor_mlp_kernel, compute_dtype=compute_dtype)

    const = lambda i: (0, 0)  # weights/biases: same (tiny) resident block every step

    means_pad = pl.pallas_call(
        kernel,
        out_shape=jax.ShapeDtypeStruct((B_pad, A_pad), jnp.float32),
        grid=(num_tiles,),
        in_specs=[
            pl.BlockSpec((TB, S), lambda i: (i, 0)),   # x: streamed batch tiles
            pl.BlockSpec((S, H), const),               # w1
            pl.BlockSpec((1, H), const),               # b1
            pl.BlockSpec((H, H), const),               # w2
            pl.BlockSpec((1, H), const),               # b2
            pl.BlockSpec((H, A_pad), const),           # w3 (padded to multiple of 8)
            pl.BlockSpec((1, A_pad), const),           # b3 (padded)
        ],
        out_specs=pl.BlockSpec((TB, A_pad), lambda i: (i, 0)),
        compiler_params=pltpu.CompilerParams(
            dimension_semantics=("parallel",),         # shard batch tiles across TCs (v7x)
        ),
    )(x_pad, params["w1"], params["b1"], params["w2"], params["b2"], w3, b3)

    means = means_pad[:B, :A] if (B_pad != B or A_pad != A) else means_pad
    # stds depends only on a parameter, not on x — hoisted out of the kernel.
    stds = jnp.clip(jnp.exp(params["std"]), 0.001, 50.0)
    return means, stds


def init_actor_params(key, state_dim, n_actions, hidden=64):
    """Deterministic init mimicking PyTorch nn.Linear default (U[-1/sqrt(fan_in), 1/sqrt(fan_in)])."""
    ks = jax.random.split(key, 6)

    def linear(kw, kb, fan_in, fan_out):
        bound = 1.0 / jnp.sqrt(fan_in)
        w = jax.random.uniform(kw, (fan_in, fan_out), jnp.float32, -bound, bound)
        b = jax.random.uniform(kb, (1, fan_out), jnp.float32, -bound, bound)
        return w, b

    w1, b1 = linear(ks[0], ks[1], state_dim, hidden)
    w2, b2 = linear(ks[2], ks[3], hidden, hidden)
    w3, b3 = linear(ks[4], ks[5], hidden, n_actions)
    # nn.Parameter(torch.full((n_actions,), 0.1))
    std = jnp.full((n_actions,), 0.1, dtype=jnp.float32)
    return dict(w1=w1, b1=b1, w2=w2, b2=b2, w3=w3, b3=b3, std=std)


def actor_forward_ref(x, p):
    h1 = jnp.tanh(x @ p["w1"] + p["b1"])
    h2 = jnp.tanh(h1 @ p["w2"] + p["b2"])
    means = h2 @ p["w3"] + p["b3"]
    stds = jnp.clip(jnp.exp(p["std"]), 0.001, 50.0)
    return means, stds


if __name__ == "__main__":
    key = jax.random.PRNGKey(0)
    k_params, k_x1, k_x2 = jax.random.split(key, 3)

    state_dim, n_actions = 16, 4
    params = init_actor_params(k_params, state_dim, n_actions)

    # Small demo batch (single grid step).
    x_small = jax.random.normal(k_x1, (8, state_dim), dtype=jnp.float32)
    means, stds = actor_forward(x_small, params)
    means = jax.block_until_ready(means)
    stds = jax.block_until_ready(stds)
    means_ref, stds_ref = actor_forward_ref(x_small, params)
    assert means.shape == (8, n_actions) and stds.shape == (n_actions,)
    assert jnp.allclose(means, means_ref, atol=1e-5, rtol=1e-5)
    assert jnp.allclose(stds, stds_ref, atol=1e-6, rtol=1e-6)

    # Larger, non-multiple-of-tile batch: exercises the ceil-split padding path and
    # the multi-step (>= 2 tiles) pipelined grid.
    x_big = jax.random.normal(k_x2, (300, state_dim), dtype=jnp.float32)
    means_b, _ = actor_forward(x_big, params, batch_tile=128)  # 3 grid steps
    means_b = jax.block_until_ready(means_b)
    means_b_ref, _ = actor_forward_ref(x_big, params)
    assert means_b.shape == (300, n_actions)
    assert jnp.allclose(means_b, means_b_ref, atol=1e-5, rtol=1e-5)

    # Optional bf16-matmul path (f32 accumulation); looser tolerance expected.
    means_bf, _ = actor_forward(x_big, params, use_bf16=True)
    means_bf = jax.block_until_ready(means_bf)
    assert jnp.allclose(means_bf, means_b_ref, atol=2e-2, rtol=2e-2)

    print("KERNEL_OK")
</pallas_src>

<mosaic_0001>
module attributes {stable_mosaic.version = 11 : i64} {
  func.func @actor_mlp_kernel(%arg0: i32, %arg1: memref<8x16xf32, #tpu.memory_space<vmem>>, %arg2: memref<16x64xf32, #tpu.memory_space<vmem>>, %arg3: memref<1x64xf32, #tpu.memory_space<vmem>>, %arg4: memref<64x64xf32, #tpu.memory_space<vmem>>, %arg5: memref<1x64xf32, #tpu.memory_space<vmem>>, %arg6: memref<64x8xf32, #tpu.memory_space<vmem>>, %arg7: memref<1x8xf32, #tpu.memory_space<vmem>>, %arg8: memref<8x8xf32, #tpu.memory_space<vmem>>) attributes {dimension_semantics = [#tpu.dimension_semantics<parallel>], iteration_bounds = array<i64: 1>, scalar_prefetch = 0 : i64, scratch_operands = 0 : i64, tpu.core_type = #tpu.core_type<tc>, window_params = [{transform_indices = @transform_0, window_bounds = array<i64: 8, 16>}, {pipeline_mode = #tpu.pipeline_mode<synchronous>, transform_indices = @transform_1, window_bounds = array<i64: 16, 64>}, {pipeline_mode = #tpu.pipeline_mode<synchronous>, transform_indices = @transform_2, window_bounds = array<i64: 1, 64>}, {pipeline_mode = #tpu.pipeline_mode<synchronous>, transform_indices = @transform_3, window_bounds = array<i64: 64, 64>}, {pipeline_mode = #tpu.pipeline_mode<synchronous>, transform_indices = @transform_4, window_bounds = array<i64: 1, 64>}, {pipeline_mode = #tpu.pipeline_mode<synchronous>, transform_indices = @transform_5, window_bounds = array<i64: 64, 8>}, {pipeline_mode = #tpu.pipeline_mode<synchronous>, transform_indices = @transform_6, window_bounds = array<i64: 1, 8>}, {transform_indices = @transform_7, window_bounds = array<i64: 8, 8>}]} {
    %c0 = arith.constant 0 : index
    %c0_0 = arith.constant 0 : index
    %0 = vector.load %arg1[%c0, %c0_0] : memref<8x16xf32, #tpu.memory_space<vmem>>, vector<8x16xf32>
    %c0_1 = arith.constant 0 : index
    %c0_2 = arith.constant 0 : index
    %1 = vector.load %arg2[%c0_1, %c0_2] : memref<16x64xf32, #tpu.memory_space<vmem>>, vector<16x64xf32>
    %cst = arith.constant dense<0.000000e+00> : vector<8x64xf32>
    %2 = tpu.matmul %0, %1, %cst {dimension_numbers = #tpu.dot_dimension_numbers<[1], [0], [0], [1], [0, 0, 1, 1], [], []>} : vector<8x16xf32>, vector<16x64xf32>, vector<8x64xf32> -> vector<8x64xf32>
    %c0_3 = arith.constant 0 : index
    %c0_4 = arith.constant 0 : index
    %3 = vector.load %arg3[%c0_3, %c0_4] : memref<1x64xf32, #tpu.memory_space<vmem>>, vector<1x64xf32>
    %4 = vector.broadcast %3 : vector<1x64xf32> to vector<8x64xf32>
    %5 = arith.addf %2, %4 : vector<8x64xf32>
    %6 = math.tanh %5 : vector<8x64xf32>
    %c0_5 = arith.constant 0 : index
    %c0_6 = arith.constant 0 : index
    %7 = vector.load %arg4[%c0_5, %c0_6] : memref<64x64xf32, #tpu.memory_space<vmem>>, vector<64x64xf32>
    %cst_7 = arith.constant dense<0.000000e+00> : vector<8x64xf32>
    %8 = tpu.matmul %6, %7, %cst_7 {dimension_numbers = #tpu.dot_dimension_numbers<[1], [0], [0], [1], [0, 0, 1, 1], [], []>} : vector<8x64xf32>, vector<64x64xf32>, vector<8x64xf32> -> vector<8x64xf32>
    %c0_8 = arith.constant 0 : index
    %c0_9 = arith.constant 0 : index
    %9 = vector.load %arg5[%c0_8, %c0_9] : memref<1x64xf32, #tpu.memory_space<vmem>>, vector<1x64xf32>
    %10 = vector.broadcast %9 : vector<1x64xf32> to vector<8x64xf32>
    %11 = arith.addf %8, %10 : vector<8x64xf32>
    %12 = math.tanh %11 : vector<8x64xf32>
    %c0_10 = arith.constant 0 : index
    %c0_11 = arith.constant 0 : index
    %13 = vector.load %arg6[%c0_10, %c0_11] : memref<64x8xf32, #tpu.memory_space<vmem>>, vector<64x8xf32>
    %cst_12 = arith.constant dense<0.000000e+00> : vector<8x8xf32>
    %14 = tpu.matmul %12, %13, %cst_12 {dimension_numbers = #tpu.dot_dimension_numbers<[1], [0], [0], [1], [0, 0, 1, 1], [], []>} : vector<8x64xf32>, vector<64x8xf32>, vector<8x8xf32> -> vector<8x8xf32>
    %c0_13 = arith.constant 0 : index
    %c0_14 = arith.constant 0 : index
    %15 = vector.load %arg7[%c0_13, %c0_14] : memref<1x8xf32, #tpu.memory_space<vmem>>, vector<1x8xf32>
    %16 = vector.broadcast %15 : vector<1x8xf32> to vector<8x8xf32>
    %17 = arith.addf %14, %16 : vector<8x8xf32>
    %c0_15 = arith.constant 0 : index
    %c0_16 = arith.constant 0 : index
    %18 = vector.load %arg8[%c0_15, %c0_16] : memref<8x8xf32, #tpu.memory_space<vmem>>, vector<8x8xf32>
    tpu.vector_store %arg8[%c0_15, %c0_16], %17 {strides = array<i32>} : memref<8x8xf32, #tpu.memory_space<vmem>>, vector<8x8xf32>,
    return
  }
  func.func @transform_0(%arg0: i32) -> (i32, i32) {
    %c0_i32 = arith.constant 0 : i32
    %c0_i32_0 = arith.constant 0 : i32
    return %arg0, %c0_i32 : i32, i32
  }
  func.func @transform_1(%arg0: i32) -> (i32, i32) {
    %c0_i32 = arith.constant 0 : i32
    %c0_i32_0 = arith.constant 0 : i32
    %c0_i32_1 = arith.constant 0 : i32
    return %c0_i32, %c0_i32_0 : i32, i32
  }
  func.func @transform_2(%arg0: i32) -> (i32, i32) {
    %c0_i32 = arith.constant 0 : i32
    %c0_i32_0 = arith.constant 0 : i32
    %c0_i32_1 = arith.constant 0 : i32
    return %c0_i32, %c0_i32_0 : i32, i32
  }
  func.func @transform_3(%arg0: i32) -> (i32, i32) {
    %c0_i32 = arith.constant 0 : i32
    %c0_i32_0 = arith.constant 0 : i32
    %c0_i32_1 = arith.constant 0 : i32
    return %c0_i32, %c0_i32_0 : i32, i32
  }
  func.func @transform_4(%arg0: i32) -> (i32, i32) {
    %c0_i32 = arith.constant 0 : i32
    %c0_i32_0 = arith.constant 0 : i32
    %c0_i32_1 = arith.constant 0 : i32
    return %c0_i32, %c0_i32_0 : i32, i32
  }
  func.func @transform_5(%arg0: i32) -> (i32, i32) {
    %c0_i32 = arith.constant 0 : i32
    %c0_i32_0 = arith.constant 0 : i32
    %c0_i32_1 = arith.constant 0 : i32
    return %c0_i32, %c0_i32_0 : i32, i32
  }
  func.func @transform_6(%arg0: i32) -> (i32, i32) {
    %c0_i32 = arith.constant 0 : i32
    %c0_i32_0 = arith.constant 0 : i32
    %c0_i32_1 = arith.constant 0 : i32
    return %c0_i32, %c0_i32_0 : i32, i32
  }
  func.func @transform_7(%arg0: i32) -> (i32, i32) {
    %c0_i32 = arith.constant 0 : i32
    %c0_i32_0 = arith.constant 0 : i32
    return %arg0, %c0_i32 : i32, i32
  }
}

</mosaic_0001>

<bundles_post_ra>
// kernel: actor_forward.1
= control target key start
LH: loop header
LB: loop body
LE: loop exit
PB: predicated region body
PF: predicated region fallthrough
CT: control target
= control target key end

     0   :  { %v401_v0 = vmov 0.0|0.0   ;;  %vm402_vm0 = vmmov 0   ;;  %v403_v3 = vmov 0.0   ;;  %vm36_vm1 = vcmask 130048   ;;  %s527_s1 = inlined_call_operand.vmem [shape: f32[16,64], index: 1, kind: input, shape index: {}]   ;;  %s528_s3 = inlined_call_operand.vmem [shape: f32[64,64], index: 3, kind: input, shape index: {}]   ;;  %s529_s0 = inlined_call_operand.vmem [shape: f32[8,16], index: 0, kind: input, shape index: {}]   ;;  %s530_s5 = inlined_call_operand.vmem [shape: f32[64,8], index: 5, kind: input, shape index: {}]   ;;  %s531_s2 = inlined_call_operand.vmem [shape: f32[1,64], index: 2, kind: input, shape index: {}]   ;;  %s532_s4 = inlined_call_operand.vmem [shape: f32[1,64], index: 4, kind: input, shape index: {}]   ;;  %s533_s6 = inlined_call_operand.vmem [shape: f32[1,8], index: 6, kind: input, shape index: {}]   ;;  %s534_s7 = inlined_call_operand.vmem [shape: f32[8,8], index: 7, kind: output, shape index: {}]  }
   0x1   :  { %367 = vmatprep.subr.bf16.mxu0 %v401_v0  ;;  %v27_v1 = vld [vmem:[%s527_s1] sm:$0xff]  ;;  %v28_v2 = vld [vmem:[%s527_s1 + $0x8] sm:$0xff]  ;;  %326 = vmatprep.mubr.msk.f32.mxu0 %vm402_vm0, %v403_v3  ;;  %v113_v9 = vld [vmem:[%s528_s3 + $0x10] sm:$0xff]  ;;  %vm126_vm2 = vcmask 523264   ;;  %vm289_vm3 = vcmask 64512  }
   0x2   :  { %v368_v4 = vpack.c.bf16 %v28_v2, %v27_v1  ;;  %370 = vmatprep.subr.bf16.mxu1 %v401_v0  ;;  %v111_v5 = vld [vmem:[%s528_s3] sm:$0xff]  ;;  %v112_v6 = vld [vmem:[%s528_s3 + $0x8] sm:$0xff]  ;;  %345 = vmatprep.mubr.msk.f32.mxu1 %vm402_vm0, %v403_v3  ;;  %v114_v10 = vld [vmem:[%s528_s3 + $0x18] sm:$0xff] }
   0x3   :  { %v371_v7 = vpack.c.bf16 %v112_v6, %v111_v5  ;;  %v26_v8 = vld [vmem:[%s529_s0] sm:$0xff]  ;;  %v374_v11 = vpack.c.bf16 %v114_v10, %v113_v9  ;;  %v116_v13 = vld [vmem:[%s528_s3 + $0x28] sm:$0xff]  ;;  %v117_v15 = vld [vmem:[%s528_s3 + $0x30] sm:$0xff] }
   0x4   :  { %369 = vmatpush3.bf16.msra.mxu0 %v368_v4  ;;  %v115_v12 = vld [vmem:[%s528_s3 + $0x20] sm:$0xff]  ;;  %v118_v16 = vld [vmem:[%s528_s3 + $0x38] sm:$0xff]  ;;  %v202_v19 = vld [vmem:[%s530_s5 + $0x8] sm:$0xff] }
   0x5   :  { %372 = vmatpush3.bf16.msra.mxu1 %v371_v7  ;;  %382 = vmatprep.subr.bf16.mxu0 %v401_v0  ;;  %v377_v14 = vpack.c.bf16 %v116_v13, %v115_v12  ;;  %v380_v17 = vpack.c.bf16 %v118_v16, %v117_v15  ;;  %v201_v18 = vld [vmem:[%s530_s5] sm:$0xff]  ;;  %v203_v26 = vld [vmem:[%s530_s5 + $0x10] sm:$0xff]  ;;  %v204_v27 = vld [vmem:[%s530_s5 + $0x18] sm:$0xff] }
   0x6   :  { %373 = vmatprep.subr.bf16.mxu1 %v401_v0  ;;  %v383_v20 = vpack.c.bf16 %v202_v19, %v201_v18  ;;  %v295_v21 = vld [vmem:[%s531_s2] ss:$0 sm:$0xff]  ;;  %v386_v28 = vpack.c.bf16 %v204_v27, %v203_v26  ;;  %v206_v30 = vld [vmem:[%s530_s5 + $0x28] sm:$0xff]  ;;  %v207_v32 = vld [vmem:[%s530_s5 + $0x30] sm:$0xff] }
   0x7   :  { %327 = vmatmul.mubr.msk.f32.vlgmr.msra.gmra.mrb[0].mxu0 %vm36_vm1, %v26_v8  ;;  %v205_v29 = vld [vmem:[%s530_s5 + $0x20] sm:$0xff]  ;;  %v208_v33 = vld [vmem:[%s530_s5 + $0x38] sm:$0xff] }
   0x8   :  { %364 = vmatprep.mubr.msk.f32.mxu0 %vm402_vm0, %v403_v3  ;;  %384 = vmatpush3.bf16.msra.mxu0 %v383_v20  ;;  %v389_v31 = vpack.c.bf16 %v206_v30, %v205_v29  ;;  %v392_v34 = vpack.c.bf16 %v208_v33, %v207_v32  ;;  %v297_v35 = vld [vmem:[%s532_s4] ss:$0 sm:$0xff] }
   0x9   :  { %375 = vmatpush3.bf16.msra.mxu1 %v374_v11  ;;  %385 = vmatprep.subr.bf16.mxu0 %v401_v0  ;;  %v299_v40 = vld [vmem:[%s533_s6] ss:$0 sm:$0xff] }
   0xa   :  { %376 = vmatprep.subr.bf16.mxu1 %v401_v0 }
   0xc   :  { %387 = vmatpush3.bf16.msra.mxu0 %v386_v28 }
   0xd   :  { %378 = vmatpush3.bf16.msra.mxu1 %v377_v14  ;;  %388 = vmatprep.subr.bf16.mxu0 %v401_v0 }
   0xe   :  { %379 = vmatprep.subr.bf16.mxu1 %v401_v0 }
  0x10   :  { %390 = vmatpush3.bf16.msra.mxu0 %v389_v31 }
  0x11   :  { %381 = vmatpush3.bf16.msra.mxu1 %v380_v17  ;;  %391 = vmatprep.subr.bf16.mxu0 %v401_v0 }
  0x14   :  { %393 = vmatpush3.bf16.msra.mxu0 %v392_v34 }
  0xda   :  { %v106_v22 = vpop.f32.mrb[0].mxu0 }
  0xdb   :  { %v107_v23 = vadd.f32 %v295_v21, %v106_v22  ;;  %v328_v24 = vpop.f32.mrb[1].mxu0 }
  0xdd   :  { %397 = vtanh.f32 %v107_v23 }
  0xe7   :  { %v398_v25 = vpop.eup %397 }
  0xe8   :  { %346 = vmatmul.mubr.msk.f32.vlgmr.msra.gmra.mrb[0].mxu1 %vm126_vm2, %v398_v25 }
 0x1bb   :  { %v196_v36 = vpop.f32.mrb[0].mxu1 }
 0x1bc   :  { %v197_v37 = vadd.f32 %v297_v35, %v196_v36  ;;  %v347_v38 = vpop.f32.mrb[1].mxu1 }
 0x1be   :  { %399 = vtanh.f32 %v197_v37 }
 0x1c8   :  { %v400_v39 = vpop.eup %399 }
 0x1c9   :  { %365 = vmatmul.mubr.msk.f32.vlgmr.msra.gmra.mrb[2].mxu0 %vm126_vm2, %v400_v39 }
 0x29c   :  { %v285_v41 = vpop.f32.mrb[2].mxu0 }
 0x29d   :  { %v286_v42 = vadd.f32 %v299_v40, %v285_v41  ;;  %v366_v43 = vpop.f32.mrb[3].mxu0 }
 0x29f   :  { %290 = vst.msk [vmem:[%s534_s7] sm:$0xff] %vm289_vm3, %v286_v42 }

</bundles_post_ra>
